<compile_context>
chip_gen: v7x
topology: tpu7x:2x2x1
jax: 0.10.0
libtpu: 0.0.40
codegen_flags: <defaults>
</compile_context>

<pallas_src>
import jax
import jax.numpy as jnp
from jax.experimental import pallas as pl
from jax.experimental.pallas import tpu as pltpu

# Target bytes for one grid step's blocks (x1 + x2 + out), single-buffered.
_VMEM_BLOCK_BUDGET = 4 * 1024 * 1024


def _largest_divisor(n, cap, multiple_of=1):
    """Largest d with d | n, d <= cap and d % multiple_of == 0, else None."""
    cap = min(cap, n)
    for d in range(cap, 0, -1):
        if n % d == 0 and d % multiple_of == 0:
            return d
    return None


def _zero_pad(x, axis, before, after, dtype):
    """Zero-pad `x` along `axis` with static widths (via concatenation)."""
    if before == 0 and after == 0:
        return x
    parts = []
    if before:
        shape = list(x.shape)
        shape[axis] = before
        parts.append(jnp.zeros(tuple(shape), dtype))
    parts.append(x)
    if after:
        shape = list(x.shape)
        shape[axis] = after
        parts.append(jnp.zeros(tuple(shape), dtype))
    return jnp.concatenate(parts, axis=axis)


def make_cat(x1_shape, x2_shape, dtype):
    N, C1, H1, W1 = x1_shape
    N2, C2, H2, W2 = x2_shape
    assert N == N2, "batch dims must match"
    assert C1 >= 1 and C2 >= 1
    diffY, diffX = H2 - H1, W2 - W1
    assert diffY >= 0 and diffX >= 0, "x2 must be spatially >= x1"
    top, bot = diffY // 2, diffY - diffY // 2
    left, right = diffX // 2, diffX - diffX // 2
    C = C1 + C2
    itemsize = jnp.dtype(dtype).itemsize

    # Channel tile: must divide C2 so the x2/x1 channel split falls on a tile
    # boundary; capped so the three resident blocks stay within budget.
    per_chan_bytes = (2 * H2 * W2 + H1 * W1) * itemsize
    cap = max(1, _VMEM_BLOCK_BUDGET // per_chan_bytes)

    # Lane-dense collapsed path (reshape H,W -> H*W) only valid when no
    # W-padding is needed; channels become the sublane axis there, so the
    # tile must additionally be a multiple of 8.
    collapse = diffX == 0
    tc = _largest_divisor(C2, cap, multiple_of=8) if collapse else None
    if tc is None:
        collapse = False
        tc = _largest_divisor(C2, cap)  # always >= 1

    nb2 = C2 // tc                 # number of x2 channel tiles (exact)
    nb1 = pl.cdiv(C1, tc)          # number of x1 channel tiles (may be partial)
    c1_blk = min(tc, C1)           # x1 input channel-block size
    grid = (N, nb2 + nb1)

    if collapse:
        hw2, hw1 = H2 * W2, H1 * W1   # W1 == W2 here
        pad_lo, pad_hi = top * W2, bot * W2

        def kernel(x1_ref, x2_ref, o_ref):
            c = pl.program_id(1)

            @pl.when(c < nb2)      # x2 half: straight lane-dense copy
            def _():
                o_ref[...] = x2_ref[...]

            @pl.when(c >= nb2)     # x1 half: pad in registers, single store
            def _():
                o_ref[:, :c1_blk, :] = _zero_pad(
                    x1_ref[...], -1, pad_lo, pad_hi, dtype)

        in_specs = [
            pl.BlockSpec((1, c1_blk, hw1),
                         lambda n, c: (n, jnp.maximum(c - nb2, 0), 0)),
            pl.BlockSpec((1, tc, hw2),
                         lambda n, c: (n, jnp.minimum(c, nb2 - 1), 0)),
        ]
        out_specs = pl.BlockSpec((1, tc, hw2), lambda n, c: (n, c, 0))
        out_shape = jax.ShapeDtypeStruct((N, C, hw2), dtype)
    else:
        def kernel(x1_ref, x2_ref, o_ref):
            c = pl.program_id(1)

            @pl.when(c < nb2)      # x2 half: straight copy
            def _():
                o_ref[...] = x2_ref[...]

            @pl.when(c >= nb2)     # x1 half: pad W then H in registers
            def _():
                x1 = _zero_pad(x1_ref[...], -1, left, right, dtype)
                x1 = _zero_pad(x1, -2, top, bot, dtype)
                o_ref[:, :c1_blk, :, :] = x1

        in_specs = [
            pl.BlockSpec((1, c1_blk, H1, W1),
                         lambda n, c: (n, jnp.maximum(c - nb2, 0), 0, 0)),
            pl.BlockSpec((1, tc, H2, W2),
                         lambda n, c: (n, jnp.minimum(c, nb2 - 1), 0, 0)),
        ]
        out_specs = pl.BlockSpec((1, tc, H2, W2), lambda n, c: (n, c, 0, 0))
        out_shape = jax.ShapeDtypeStruct((N, C, H2, W2), dtype)

    call = pl.pallas_call(
        kernel,
        out_shape=out_shape,
        grid=grid,
        in_specs=in_specs,
        out_specs=out_specs,
        compiler_params=pltpu.CompilerParams(
            dimension_semantics=("parallel", "parallel"),
            vmem_limit_bytes=32 * 1024 * 1024,
        ),
    )

    if collapse:
        def run(x1, x2):
            out = call(x1.reshape(N, C1, hw1), x2.reshape(N, C2, hw2))
            return out.reshape(N, C, H2, W2)
    else:
        def run(x1, x2):
            return call(x1, x2)
    return run


def cat(x1, x2):
    """Pallas equivalent of Cat().forward(x1, x2) on NCHW inputs."""
    assert x1.dtype == x2.dtype
    return make_cat(x1.shape, x2.shape, x2.dtype)(x1, x2)


def _reference(x1, x2):
    dY = x2.shape[2] - x1.shape[2]
    dX = x2.shape[3] - x1.shape[3]
    x1p = jnp.pad(x1, ((0, 0), (0, 0),
                       (dY // 2, dY - dY // 2),
                       (dX // 2, dX - dX // 2)))
    return jnp.concatenate([x2, x1p], axis=1)


if __name__ == "__main__":
    key = jax.random.PRNGKey(0)
    cases = [
        # (x1_shape, x2_shape)
        ((2, 4, 13, 14), (2, 4, 16, 16)),    # odd pad on both axes  -> 4D path
        ((2, 8, 14, 16), (2, 16, 16, 16)),   # diffX == 0, 8-tileable -> collapsed lane-dense path
        ((2, 10, 16, 14), (2, 8, 16, 16)),   # W-pad only, partial last x1 tile -> 4D path
        ((1, 3, 16, 16), (1, 5, 16, 16)),    # awkward channel counts -> 4D fallback
    ]
    for i, (s1, s2) in enumerate(cases):
        k1, k2 = jax.random.split(jax.random.fold_in(key, i))
        x1 = jax.random.normal(k1, s1, dtype=jnp.float32)
        x2 = jax.random.normal(k2, s2, dtype=jnp.float32)
        out = jax.block_until_ready(cat(x1, x2))
        ref = _reference(x1, x2)
        assert out.shape == ref.shape and out.dtype == ref.dtype
        assert jnp.array_equal(out, ref), f"mismatch for case {i}: {s1} vs {s2}"
    print("KERNEL_OK")
</pallas_src>

<mosaic_0001>
module attributes {stable_mosaic.version = 11 : i64} {
  func.func @kernel(%arg0: i32, %arg1: i32, %arg2: memref<1x4x13x14xf32, #tpu.memory_space<vmem>>, %arg3: memref<1x4x16x16xf32, #tpu.memory_space<vmem>>, %arg4: memref<1x4x16x16xf32, #tpu.memory_space<vmem>>) attributes {dimension_semantics = [#tpu.dimension_semantics<parallel>, #tpu.dimension_semantics<parallel>], iteration_bounds = array<i64: 2, 2>, scalar_prefetch = 0 : i64, scratch_operands = 0 : i64, tpu.core_type = #tpu.core_type<tc>, window_params = [{transform_indices = @transform_0, window_bounds = array<i64: 1, 4, 13, 14>}, {transform_indices = @transform_1, window_bounds = array<i64: 1, 4, 16, 16>}, {transform_indices = @transform_2, window_bounds = array<i64: 1, 4, 16, 16>}]} {
    %c1_i32 = arith.constant 1 : i32
    %0 = arith.cmpi slt, %arg1, %c1_i32 : i32
    %1 = arith.extui %0 : i1 to i32
    %c0_i32 = arith.constant 0 : i32
    %2 = arith.cmpi ne, %1, %c0_i32 : i32
    scf.if %2 {
      %c0 = arith.constant 0 : index
      %c0_2 = arith.constant 0 : index
      %c0_3 = arith.constant 0 : index
      %c0_4 = arith.constant 0 : index
      %6 = vector.load %arg3[%c0, %c0_2, %c0_3, %c0_4] : memref<1x4x16x16xf32, #tpu.memory_space<vmem>>, vector<1x4x16x16xf32>
      %c0_5 = arith.constant 0 : index
      %c0_6 = arith.constant 0 : index
      %c0_7 = arith.constant 0 : index
      %c0_8 = arith.constant 0 : index
      %7 = vector.load %arg4[%c0_5, %c0_6, %c0_7, %c0_8] : memref<1x4x16x16xf32, #tpu.memory_space<vmem>>, vector<1x4x16x16xf32>
      tpu.vector_store %arg4[%c0_5, %c0_6, %c0_7, %c0_8], %6 {strides = array<i32>} : memref<1x4x16x16xf32, #tpu.memory_space<vmem>>, vector<1x4x16x16xf32>,
    } else {
    }
    %c1_i32_0 = arith.constant 1 : i32
    %3 = arith.cmpi sge, %arg1, %c1_i32_0 : i32
    %4 = arith.extui %3 : i1 to i32
    %c0_i32_1 = arith.constant 0 : i32
    %5 = arith.cmpi ne, %4, %c0_i32_1 : i32
    scf.if %5 {
      %c0 = arith.constant 0 : index
      %c0_2 = arith.constant 0 : index
      %c0_3 = arith.constant 0 : index
      %c0_4 = arith.constant 0 : index
      %6 = vector.load %arg2[%c0, %c0_2, %c0_3, %c0_4] : memref<1x4x13x14xf32, #tpu.memory_space<vmem>>, vector<1x4x13x14xf32>
      %cst = arith.constant 0.000000e+00 : f32
      %7 = vector.broadcast %cst : f32 to vector<1x4x13x1xf32>
      %cst_5 = arith.constant 0.000000e+00 : f32
      %8 = vector.broadcast %cst_5 : f32 to vector<1x4x13x1xf32>
      %9 = tpu.concatenate %7, %6, %8 in 3 : vector<1x4x13x1xf32>, vector<1x4x13x14xf32>, vector<1x4x13x1xf32> -> vector<1x4x13x16xf32>
      %cst_6 = arith.constant 0.000000e+00 : f32
      %10 = vector.broadcast %cst_6 : f32 to vector<1x4x1x16xf32>
      %cst_7 = arith.constant 0.000000e+00 : f32
      %11 = vector.broadcast %cst_7 : f32 to vector<1x4x2x16xf32>
      %12 = tpu.concatenate %10, %9, %11 in 2 : vector<1x4x1x16xf32>, vector<1x4x13x16xf32>, vector<1x4x2x16xf32> -> vector<1x4x16x16xf32>
      %c0_8 = arith.constant 0 : index
      %c0_9 = arith.constant 0 : index
      %c0_10 = arith.constant 0 : index
      %c0_11 = arith.constant 0 : index
      %13 = vector.load %arg4[%c0_8, %c0_9, %c0_10, %c0_11] : memref<1x4x16x16xf32, #tpu.memory_space<vmem>>, vector<1x4x16x16xf32>
      tpu.vector_store %arg4[%c0_8, %c0_9, %c0_10, %c0_11], %12 {strides = array<i32>} : memref<1x4x16x16xf32, #tpu.memory_space<vmem>>, vector<1x4x16x16xf32>,
    } else {
    }
    return
  }
  func.func @transform_0(%arg0: i32, %arg1: i32) -> (i32, i32, i32, i32) {
    %c1_i32 = arith.constant 1 : i32
    %0 = arith.subi %arg1, %c1_i32 : i32
    %c0_i32 = arith.constant 0 : i32
    %1 = arith.maxsi %0, %c0_i32 : i32
    %c0_i32_0 = arith.constant 0 : i32
    %c0_i32_1 = arith.constant 0 : i32
    %c0_i32_2 = arith.constant 0 : i32
    return %arg0, %1, %c0_i32_0, %c0_i32_1 : i32, i32, i32, i32
  }
  func.func @transform_1(%arg0: i32, %arg1: i32) -> (i32, i32, i32, i32) {
    %c0_i32 = arith.constant 0 : i32
    %0 = arith.minsi %arg1, %c0_i32 : i32
    %c0_i32_0 = arith.constant 0 : i32
    %c0_i32_1 = arith.constant 0 : i32
    %c0_i32_2 = arith.constant 0 : i32
    return %arg0, %0, %c0_i32_0, %c0_i32_1 : i32, i32, i32, i32
  }
  func.func @transform_2(%arg0: i32, %arg1: i32) -> (i32, i32, i32, i32) {
    %c0_i32 = arith.constant 0 : i32
    %c0_i32_0 = arith.constant 0 : i32
    %c0_i32_1 = arith.constant 0 : i32
    return %arg0, %arg1, %c0_i32, %c0_i32_0 : i32, i32, i32, i32
  }
}

</mosaic_0001>

<bundles_post_ra>
// kernel: tpu_custom_call.1
= control target key start
LH: loop header
LB: loop body
LE: loop exit
PB: predicated region body
PF: predicated region fallthrough
CT: control target
= control target key end

     0   :  { %7 = vsyncpa [#allocation3], 0  ;;  %s934_s0 = inlined_call_operand.vmem [shape: f32[2,4,13,14], index: 0, kind: input, shape index: {}]   ;;  %s935_s1 = inlined_call_operand.vmem [shape: f32[2,4,16,16], index: 1, kind: input, shape index: {}]   ;;  %s936_s2 = inlined_call_operand.hbm [shape: f32[2,8,16,16], index: 2, kind: output, shape index: {}]  }
   0x1   :  { %9 = vsyncpa [#allocation3 + $0x1], 0  ;;  %s719_s9 = smov 0   ;;  %s721_s10 = smov 0  }
   0x2   :  { %s723_s11 = smov 0   ;;  %s725_s12 = smov 0  }
   0x3   :  { %s727_s13 = smov 0   ;;  %s729_s14 = smov 0  }
   0x4   :  { %s731_s15 = smov 0   ;;  %s733_s16 = smov 0  }
   0x5 LB: > { %941 = sst [smem:[#allocation5_spill]] %s694_s15  ;;  %s503_s17 = sadd.s32 4294967295, %s698_s16   ;;  %s698_s16 = sphi %s733_s16, %s15_s16   ;;  %s694_s15 = sphi %s731_s15, %s949_s15   ;;  %s690_s14 = sphi %s729_s14, %s954_s14   ;;  %s686_s13 = sphi %s727_s13, %s947_s13   ;;  %s682_s12 = sphi %s725_s12, %s953_s12   ;;  %s678_s11 = sphi %s723_s11, %s952_s11   ;;  %s674_s10 = sphi %s721_s10, %s951_s10   ;;  %s670_s9 = sphi %s719_s9, %s950_s9  }
   0x6   : > { %s504_s18 = sadd.s32 4294967294, %s698_s16   ;;  %s24_s19 = sadd.s32 1, %s690_s14 }
   0x7   : > { %p25_p0 = scmp.ge.s32.totalorder %s24_s19, 2  ;;  %s27_s20 = sadd.s32 1, %s694_s15 }
   0x8   : > { %p112_p1 = scmp.ne.s32.totalorder %s678_s11, %s674_s10  ;;  %p113_p2 = scmp.eq.s32.totalorder %s503_s17, 3 }
   0x9   : > { %s956_s19 = smov (%p25_p0, %s24_s19), 0  ;;  %s958_s20 = smov (!%p25_p0, %s27_s20), %s694_s15 }
   0xa   : > { %942 = sst [smem:[#allocation6_spill]] %s956_s19  ;;  %s98_s21 = ssub.s32 %s690_s14, %s956_s19 }
   0xb   : > { %p770_p3 = por %p113_p2, %p112_p1  ;;  %p29_p4 = scmp.ge.s32.totalorder %s958_s20, 2 }
   0xc   : > { %p118_p5 = scmp.ne.s32.totalorder %s674_s10, %s670_s9  ;;  %p119_p6 = scmp.eq.s32.totalorder %s504_s18, 3 }
   0xd   : > { %p509_p7 = scmp.ge.s32.totalorder %s698_s16, 1  ;;  %s960_s20 = smov (%p29_p4, %s958_s20), 0 }
   0xe   : > { %944 = sst [smem:[#allocation7_spill]] %s960_s20  ;;  %p779_p8 = por %p119_p6, %p118_p5 }
   0xf   : > { %p175_p9 = scmp.lt.s32.totalorder %s698_s16, 5  ;;  %s97_s24 = ssub.s32 %s694_s15, %s960_s20 }
  0x10   : > { %s102_s25 = sadd.s32 1, %s678_s11  ;;  %s99_s26 = sor.u32 %s98_s21, %s97_s24 }
  0x11   : > { %p176_p10 = pnand %p509_p7, %p175_p9  ;;  %p100_p11 = scmp.eq.s32.totalorder %s99_s26, 0 }
  0x12   : > { %s937_s28 = sand.u32 (!%p176_p10), 1, %s674_s10   ;;  %s511_s29 = sadd.s32 (!%p176_p10), 4294967295, %s682_s12 }
  0x13   : > { %s788_s27 = scalar_select %p100_p11, %s678_s11, %s102_s25  }
  0x14   : > { %179 = sbr.rel (%p176_p10) target bundleno = 209 (0xd1), region = 28  ;;  %s510_s30 = sshll.u32 (!%p176_p10), %s937_s28, 6 }
  0x15   : > { %p218_p12 = scmp.gt.s32.totalorder (!%p176_p10), %s511_s29, 0  ;;  %p221_p13 = scmp.lt.s32.totalorder (!%p176_p10), %s686_s13, 1 }
  0x16   : > { %p234_p0 = scmp.lt.s32.totalorder (!%p176_p10), %s682_s12, 0  ;;  %s806_s15 = scalar_lea.vmem (!%p176_p10), [#allocation2], %s510_s30 }
  0x17   : > { %p520_p4 = scmp.ge.s32.totalorder (!%p176_p10), %s682_s12, 1 }
  0x1b   : > { %s962_s29 = smov (!%p218_p12, %s511_s29), 0  ;;  %vm262_vm0 = vcmask (!%p520_p4), 130048  }
  0x1c   : > { %s222_s3 = scalar_select %p221_p13, %s686_s13, 1 }
  0x1d   : > { %s512_s4 = sshll.u32 %s962_s29, 2 }
  0x1e   : > { %p223_p1 = scmp.lt.s32.totalorder %s512_s4, 3  ;;  %s514_s5 = sshll.u32 %s222_s3, 3 }
  0x1f   : > { %s235_s6 = scalar_select %p234_p0, %s682_s12, 0 }
  0x20   : > { %s964_s4 = smov (!%p223_p1, %s512_s4), 3 }
  0x21   : > { %s516_s7 = sshll.u32 %s235_s6, 2  ;;  %s513_s8 = sshll.u32 %s964_s4, 1 }
  0x22   : > { %p239_p2 = scmp.lt.s32.totalorder %s516_s7, 3  ;;  %s227_s17 = sadd.s32 %s514_s5, %s513_s8 }
  0x23   : > { %s515_s18 = sshll.u32 %s227_s17, 3  ;;  %253 = sbr.rel (%p520_p4) target bundleno = 46 (0x2e), region = 32 }
  0x24   : > { %s801_s25 = scalar_lea.vmem %s934_s0, %s515_s18  ;;  %s966_s7 = smov (!%p239_p2, %s516_s7), 3 }
  0x25   : > { %s517_s26 = sshll.u32 %s966_s7, 1 }
  0x26   : > { %s243_s28 = sadd.s32 %s517_s26, %s514_s5 }
  0x27   : > { %s519_s20 = sshll.u32 %s243_s28, 3 }
  0x28   : > { %s245_s3 = scalar_lea.vmem %s935_s1, %s519_s20 }
  0x29   : > { %v254_v0 = vld [vmem:[%s245_s3] sm:$0xff] (!%p520_p4)  ;;  %v255_v1 = vld [vmem:[%s245_s3 + $0x8] sm:$0xff] (!%p520_p4)  ;;  %v256_v2 = vld [vmem:[%s245_s3 + $0x10] sm:$0xff] (!%p520_p4) }
  0x2a   : > { %263 = vst.msk [vmem:[%s806_s15] sm:$0xff] %vm262_vm0, %v254_v0  ;;  %264 = vst.msk [vmem:[%s806_s15 + $0x8] sm:$0xff] %vm262_vm0, %v255_v1  ;;  %v257_v3 = vld [vmem:[%s245_s3 + $0x18] sm:$0xff]  ;;  %v258_v4 = vld [vmem:[%s245_s3 + $0x20] sm:$0xff] }
  0x2b   : > { %265 = vst.msk [vmem:[%s806_s15 + $0x10] sm:$0xff] %vm262_vm0, %v256_v2  ;;  %v259_v5 = vld [vmem:[%s245_s3 + $0x28] sm:$0xff]  ;;  %266 = vst.msk [vmem:[%s806_s15 + $0x18] sm:$0xff] %vm262_vm0, %v257_v3  ;;  %v260_v6 = vld [vmem:[%s245_s3 + $0x30] sm:$0xff] }
  0x2c   : > { %267 = vst.msk [vmem:[%s806_s15 + $0x20] sm:$0xff] %vm262_vm0, %v258_v4  ;;  %268 = vst.msk [vmem:[%s806_s15 + $0x28] sm:$0xff] %vm262_vm0, %v259_v5  ;;  %v261_v7 = vld [vmem:[%s245_s3 + $0x38] sm:$0xff] }
  0x2d   : > { %269 = vst.msk [vmem:[%s806_s15 + $0x30] sm:$0xff] %vm262_vm0, %v260_v6  ;;  %270 = vst.msk [vmem:[%s806_s15 + $0x38] sm:$0xff] %vm262_vm0, %v261_v7 }
  0x2e PF: > { %p521_p5 = scmp.lt.s32.totalorder %s682_s12, 1 }
  0x2f   : > { %v277_v8 = vld [vmem:[%s801_s25 + $0x10] sm:$0xff] (!%p521_p5)  ;;  %v275_v9 = vld [vmem:[%s801_s25] sm:$0xff] (!%p521_p5)  ;;  %s700_s19 = smov (!%p521_p5), 1   ;;  %v278_v10 = vld [vmem:[%s801_s25 + $0x18] sm:$0x1f] (!%p521_p5)  ;;  %vm315_vm1 = vcmask (!%p521_p5), 7168  }
  0x30   : > { %274 = sbr.rel (%p521_p5) target bundleno = 182 (0xb6), region = 36  ;;  %295 = vrot.lane.b32.xlu1 (!%p521_p5), %v277_v8, %s700_s19  ;;  %291 = vrot.lane.b32.xlu0 (!%p521_p5), %v275_v9, %s700_s19  ;;  %v276_v11 = vld [vmem:[%s801_s25 + $0x8] sm:$0x1f] (!%p521_p5)  ;;  %v279_v13 = vld [vmem:[%s801_s25 + $0x20] sm:$0xff] (!%p521_p5)  ;;  %vm324_vm2 = vcmask (!%p521_p5), 121856   ;;  %vm341_vm3 = vcmask (!%p521_p5), 1040384  }
  0x31   : > { %v280_v12 = vld [vmem:[%s801_s25 + $0x28] sm:$0x1f] (!%p521_p5)  ;;  %v282_v14 = vld [vmem:[%s801_s25 + $0x38] sm:$0x1f] (!%p521_p5)  ;;  %v281_v15 = vld [vmem:[%s801_s25 + $0x30] sm:$0xff] (!%p521_p5)  ;;  %vm371_vm4 = vcmask (!%p521_p5), 130048  }
  0x32   : > { %vm366_vm5 = vcmask (!%p521_p5), 1045504  }
  0x34   : > { %297 = vrot.lane.b32.xlu1 (!%p521_p5), %v278_v10, %s700_s19  ;;  %293 = vrot.lane.b32.xlu0 (!%p521_p5), %v276_v11, %s700_s19 }
  0x38   : > { %301 = vrot.lane.b32.xlu1 %v280_v12, %s700_s19  ;;  %299 = vrot.lane.b32.xlu0 %v279_v13, %s700_s19 }
  0x3c   : > { %305 = vrot.lane.b32.xlu1 %v282_v14, %s700_s19  ;;  %303 = vrot.lane.b32.xlu0 %v281_v15, %s700_s19 }
  0xa2   : > { %v296_v16 = vpop.permute.xlu1 %295  ;;  %v292_v17 = vpop.permute.xlu0 %291 }
  0xa3   : > { %v318_v18 = vsel %vm315_vm1, 0.0, %v296_v16  ;;  %v316_v19 = vsel %vm315_vm1, 0.0, %v292_v17 }
  0xa4   : > { %v327_v20 = vsel %vm324_vm2, %v318_v18, 0.0  ;;  %v325_v21 = vsel %vm324_vm2, %v316_v19, 0.0 }
  0xa5   : > { %v345_v22 = vrot.slane %v327_v20, 7  ;;  %v342_v23 = vrot.slane %v325_v21, 7 }
  0xa6   : > { %v298_v24 = vpop.permute.xlu1 %297  ;;  %v294_v25 = vpop.permute.xlu0 %293 }
  0xa7   : > { %v363_v26 = vsel %vm341_vm3, 0.0, %v345_v22  ;;  %v362_v27 = vsel %vm341_vm3, 0.0, %v342_v23  ;;  %v319_v28 = vsel %vm315_vm1, 0.0, %v298_v24  ;;  %v317_v29 = vsel %vm315_vm1, 0.0, %v294_v25 }
  0xa8   : > { %374 = vst.msk [vmem:[%s806_s15 + $0x10] sm:$0xff] %vm371_vm4, %v363_v26  ;;  %372 = vst.msk [vmem:[%s806_s15] sm:$0xff] %vm371_vm4, %v362_v27  ;;  %v328_v30 = vsel %vm324_vm2, %v319_v28, 0.0  ;;  %v326_v31 = vsel %vm324_vm2, %v317_v29, 0.0 }
  0xa9   : > { %v346_v32 = vrot.slane %v328_v30, 7  ;;  %v343_v33 = vrot.slane %v326_v31, 7 }
  0xaa   : > { %v302_v34 = vpop.permute.xlu1 %301  ;;  %v300_v35 = vpop.permute.xlu0 %299 }
  0xab   : > { %v347_v36 = vsel %vm341_vm3, %v345_v22, %v346_v32  ;;  %v344_v37 = vsel %vm341_vm3, %v342_v23, %v343_v33  ;;  %v321_v38 = vsel %vm315_vm1, 0.0, %v302_v34  ;;  %v320_v39 = vsel %vm315_vm1, 0.0, %v300_v35 }
  0xac   : > { %v368_v40 = vsel %vm366_vm5, %v347_v36, 0.0  ;;  %v367_v41 = vsel %vm366_vm5, %v344_v37, 0.0  ;;  %v330_v42 = vsel %vm324_vm2, %v321_v38, 0.0  ;;  %v329_v43 = vsel %vm324_vm2, %v320_v39, 0.0 }
  0xad   : > { %375 = vst.msk [vmem:[%s806_s15 + $0x18] sm:$0xff] %vm371_vm4, %v368_v40  ;;  %373 = vst.msk [vmem:[%s806_s15 + $0x8] sm:$0xff] %vm371_vm4, %v367_v41  ;;  %v349_v44 = vrot.slane %v330_v42, 7  ;;  %v348_v45 = vrot.slane %v329_v43, 7 }
  0xae   : > { %v306_v46 = vpop.permute.xlu1 %305  ;;  %v304_v47 = vpop.permute.xlu0 %303 }
  0xaf   : > { %v350_v48 = vsel %vm341_vm3, %v348_v45, %v349_v44  ;;  %v364_v49 = vsel %vm341_vm3, 0.0, %v348_v45  ;;  %v323_v50 = vsel %vm315_vm1, 0.0, %v306_v46  ;;  %v322_v51 = vsel %vm315_vm1, 0.0, %v304_v47 }
  0xb0   : > { %v369_v52 = vsel %vm366_vm5, %v350_v48, 0.0  ;;  %376 = vst.msk [vmem:[%s806_s15 + $0x20] sm:$0xff] %vm371_vm4, %v364_v49  ;;  %v332_v53 = vsel %vm324_vm2, %v323_v50, 0.0  ;;  %v331_v54 = vsel %vm324_vm2, %v322_v51, 0.0 }
  0xb1   : > { %377 = vst.msk [vmem:[%s806_s15 + $0x28] sm:$0xff] %vm371_vm4, %v369_v52  ;;  %v352_v55 = vrot.slane %v332_v53, 7  ;;  %v351_v56 = vrot.slane %v331_v54, 7 }
  0xb3   : > { %v353_v57 = vsel %vm341_vm3, %v351_v56, %v352_v55  ;;  %v365_v58 = vsel %vm341_vm3, 0.0, %v351_v56 }
  0xb4   : > { %v370_v59 = vsel %vm366_vm5, %v353_v57, 0.0  ;;  %378 = vst.msk [vmem:[%s806_s15 + $0x30] sm:$0xff] %vm371_vm4, %v365_v58 }
  0xb5   : > { %379 = vst.msk [vmem:[%s806_s15 + $0x38] sm:$0xff] %vm371_vm4, %v370_v59 }
  0xb6 PF: > { %s529_s20 = sshll.u32 %s682_s12, 3  ;;  %s525_s28 = sshll.u32 %s686_s13, 4 }
  0xb7   : > { %s397_s30 = sshll.u32 %s806_s15, 4  ;;  %s394_s4 = sadd.s32 %s529_s20, %s525_s28  ;;  %s873_s30 = int_to_ptr.vmem [resolvable:$true] %s397_s30 }
  0xb8   : > { %s526_s5 = sshll.u32 %s394_s4, 7  ;;  %s946_s17 = sand.u32 1, %s674_s10  }
  0xb9   : > { %s878_s8 = scalar_lea.hbm %s936_s2, %s526_s5  ;;  %s882_s18 = scalar_lea.sflag [#allocation3], %s946_s17 }
  0xba   : > { %s604_s21 = scalar_lea.vmem %s873_s30, 1024  ;;  %s701_s12 = smov [#allocation2]  }
  0xbb   : > { %p605_p6 = scmp.ne.s32.totalorder %s873_s30, %s604_s21  ;;  %s608_s13 = sshll.u32 %s701_s12, 4  ;;  %s609_s13 = int_to_ptr.vmem [resolvable:$false] %s608_s13 }
  0xbc   : > { %s610_s15 = scalar_lea.vmem %s609_s13, 2048  ;;  %p611_p10 = scmp.lt.s32.totalorder %s873_s30, %s609_s13 }
  0xbd   : > { %p606_p7 = pnand %p605_p6, %p770_p3  ;;  %p612_p11 = scmp.lt.s32.totalorder %s610_s15, %s604_s21 }
  0xbf   : > { %p607_p9 = pneg %p606_p7  ;;  %p613_p12 = por %p612_p11, %p611_p10 }
  0xc1   : > { %p614_p13 = pnand %p613_p12, %p607_p9 }
  0xc3   : > { %617 = shalt.err (!%p614_p13)
}
  0xc4   : > { %s618_s24 = scalar_lea.hbm %s878_s8, 1024  ;;  %s622_s29 = scalar_lea.hbm %s936_s2, 4096 }
  0xc5   : > { %p619_p0 = scmp.ne.s32.totalorder %s878_s8, %s618_s24  ;;  %p623_p4 = scmp.lt.u32.totalorder %s878_s8, %s936_s2 }
  0xc6   : > { %p624_p5 = scmp.lt.u32.totalorder %s622_s29, %s618_s24  ;;  %p626_p7 = scmp.lt.u32.totalorder %s618_s24, %s878_s8 }
  0xc7   : > { %p620_p1 = pnand %p619_p0, %p770_p3 }
  0xc8   : > { %p625_p6 = por %p624_p5, %p623_p4 }
  0xc9   : > { %p621_p2 = pneg %p620_p1 }
  0xca   : > { %p627_p9 = por %p626_p7, %p625_p6 }
  0xcc   : > { %p628_p10 = pnand %p627_p9, %p621_p2 }
  0xce   : > { %631 = shalt.err (!%p628_p10)
}
  0xcf   : > { %s702_s20 = smov 128   ;;  %s703_s28 = smov 8  }
  0xd0   : > { %530 = dma.vmem_to_hbm [thread:$0]  (%p770_p3), %s873_s30, 1024, %s878_s8, %s882_s18, %s702_s20, %s702_s20, %s703_s28  }
  0xd1 PF: > { %p536_p11 = scmp.ge.s32.totalorder %s698_s16, 2  ;;  %s412_s4 = sand.u32 1, %s670_s9  }
  0xd2   : > { %s413_s5 = scalar_lea.sflag [#allocation3], %s412_s4 }
  0xd3   : > { %p533_p12 = pnand %p536_p11, %p779_p8 }
  0xd5   : > { %665 = dma.done.wait (!%p533_p12), %s413_s5, 1024  }
  0xd6   : > { %667 = vsyncadd (!%p533_p12), %s413_s5, 4294966272  ;;  %s15_s16 = sadd.s32 1, %s698_s16   ;;  %s947_s13 = sld [smem:[#allocation5_spill]] }
  0xd7   : > { %p12_p13 = scmp.ge.s32.totalorder %s15_s16, 6   ;;  %s948_s22 = sld [smem:[#allocation6_spill]] }
  0xd8   : > { %s949_s15 = sld [smem:[#allocation7_spill]]  ;;  %s950_s9 = smov %s674_s10 }
  0xd9   : > { %s951_s10 = smov %s678_s11  ;;  %s952_s11 = smov %s788_s27 }
  0xda   : > { %s953_s12 = smov %s690_s14  ;;  %14 = sbr.rel (!%p12_p13) target bundleno = 5 (0x5), region = 74 }
  0xdd   : > { %s954_s14 = smov %s948_s22 }
  0xe1   :  { %418 = vsyncpa [#allocation3], 1 }
  0xe2   :  { %420 = vsyncpa [#allocation3 + $0x1], 1 }

</bundles_post_ra>
